<compile_context>
chip_gen: v7x
topology: tpu7x:2x2x1
jax: 0.10.0
libtpu: 0.0.40
codegen_flags: <defaults>
</compile_context>

<pallas_src>
import functools

import jax
import jax.numpy as jnp
from jax.experimental import pallas as pl
from jax.experimental.pallas import tpu as pltpu


# ----------------------------------------------------------------------------
# Pallas kernel: one fused pass over a (batch, spatial-tile) block.
# Channels live on sublanes, spatial (H*W) on lanes.
# ----------------------------------------------------------------------------
def _attention_block_kernel(g_ref, x_ref, wg_ref, wx_ref, b_ref,
                            wpsi_ref, bpsi_ref, o_ref):
    # g_ref:    [F_g,   T]   g features for this (batch, spatial-tile) block
    # x_ref:    [F_l,   T]   x features
    # wg_ref:   [F_int, F_g] BN-folded W_g
    # wx_ref:   [F_int, F_l] BN-folded W_x
    # b_ref:    [F_int, 1]   folded (b_g + b_x)
    # wpsi_ref: [F_int, 1]   folded psi conv weights (single output channel)
    # bpsi_ref: [1, 1]       folded psi bias
    # o_ref:    [F_l,   T]   x * psi
    g = g_ref[...]
    x = x_ref[...]

    # Two MXU matmuls accumulated into one f32 result (MRB accumulate on v7x).
    a = jnp.dot(wg_ref[...], g, preferred_element_type=jnp.float32)
    a = a + jnp.dot(wx_ref[...], x, preferred_element_type=jnp.float32)
    a = jnp.maximum(a + b_ref[...], 0.0)                       # ReLU, [F_int, T]

    # psi conv has 1 output channel -> VPU mul + XLU sublane reduce (MXU stays free).
    logit = jnp.sum(a * wpsi_ref[...], axis=0, keepdims=True) + bpsi_ref[...]  # [1, T]
    psi = jax.nn.sigmoid(logit)                                 # exp + recip on EUP

    o_ref[...] = (x.astype(jnp.float32) * psi).astype(o_ref.dtype)


# ----------------------------------------------------------------------------
# Helpers
# ----------------------------------------------------------------------------
def _round_up(v, m):
    return (v + m - 1) // m * m


def _fold_conv_bn(p, eps=1e-5):
    """Fold Conv2d(1x1, bias=True) + BatchNorm2d (running stats) into (W2d, b)."""
    w = p["w"]                                                  # [Cout, Cin, 1, 1]
    scale = p["gamma"] / jnp.sqrt(p["var"] + eps)
    w2 = w.reshape(w.shape[0], w.shape[1]) * scale[:, None]     # [Cout, Cin]
    b2 = (p["b"] - p["mean"]) * scale + p["beta"]               # [Cout]
    return w2.astype(jnp.float32), b2.astype(jnp.float32)


def _bilinear_resize_align_corners(g, out_h, out_w):
    """F.interpolate(mode='bilinear', align_corners=True) on NCHW (wrapper-side JAX)."""
    N, C, H, W = g.shape
    if (H, W) == (out_h, out_w):
        return g
    ys = jnp.linspace(0.0, H - 1.0, out_h) if out_h > 1 else jnp.zeros((1,), jnp.float32)
    xs = jnp.linspace(0.0, W - 1.0, out_w) if out_w > 1 else jnp.zeros((1,), jnp.float32)
    y0 = jnp.floor(ys).astype(jnp.int32); y1 = jnp.minimum(y0 + 1, H - 1)
    x0 = jnp.floor(xs).astype(jnp.int32); x1 = jnp.minimum(x0 + 1, W - 1)
    wy = (ys - y0.astype(ys.dtype))[:, None]
    wx = (xs - x0.astype(xs.dtype))[None, :]
    g00 = g[:, :, y0][:, :, :, x0]
    g01 = g[:, :, y0][:, :, :, x1]
    g10 = g[:, :, y1][:, :, :, x0]
    g11 = g[:, :, y1][:, :, :, x1]
    top = g00 * (1.0 - wx) + g01 * wx
    bot = g10 * (1.0 - wx) + g11 * wx
    return top * (1.0 - wy) + bot * wy


def _pick_tile_hw(tile_hw, HW, N, F_g, F_l, itemsize, vmem_budget=20 << 20):
    """Pick a lane-dense spatial tile (multiple of 128) that fits VMEM and keeps a
    multi-step grid so double-buffering / megacore sharding stay active."""
    t = min(tile_hw, _round_up(HW, 128))
    t = max(128, (t // 128) * 128)
    # Fit double-buffered g/x/out tiles into the VMEM budget.
    per_lane_bytes = 2 * (F_g + 2 * F_l) * itemsize
    t_budget = max(128, (vmem_budget // max(per_lane_bytes, 1)) // 128 * 128)
    t = min(t, t_budget)
    # Aim for >= ~4 grid steps overall.
    while t > 128 and N * pl.cdiv(HW, t) < 4:
        t = max(128, ((t // 2) // 128) * 128)
    return t


# ----------------------------------------------------------------------------
# Public wrapper (PyTorch-style NCHW in/out)
# ----------------------------------------------------------------------------
def attention_block_forward(g, x, params, *, tile_hw=2048):
    """g: [N, F_g, Hg, Wg], x: [N, F_l, H, W]  ->  [N, F_l, H, W]."""
    N, F_l, H, W = x.shape
    F_g = g.shape[1]

    if g.shape[2:] != x.shape[2:]:
        g = _bilinear_resize_align_corners(g, H, W)

    # Fold BatchNorm into the 1x1 convs (inference-mode running stats).
    wg, bg = _fold_conv_bn(params["W_g"])          # [F_int, F_g], [F_int]
    wx, bx = _fold_conv_bn(params["W_x"])          # [F_int, F_l], [F_int]
    wpsi, bpsi = _fold_conv_bn(params["psi"])      # [1, F_int],  [1]
    F_int = wg.shape[0]

    HW = H * W
    itemsize = jnp.dtype(x.dtype).itemsize
    TILE_HW = _pick_tile_hw(tile_hw, HW, N, F_g, F_l, itemsize)
    HWp = _round_up(HW, TILE_HW)

    # NCHW -> [N, C, H*W] is a free reshape (contiguous, no HBM pass).
    g3 = g.reshape(N, F_g, HW)
    x3 = x.reshape(N, F_l, HW)
    if HWp != HW:
        g3 = jnp.pad(g3, ((0, 0), (0, 0), (0, HWp - HW)))
        x3 = jnp.pad(x3, ((0, 0), (0, 0), (0, HWp - HW)))

    b_p = (bg + bx).reshape(F_int, 1)              # pre-summed branch biases
    wpsi_p = wpsi.reshape(F_int, 1)
    bpsi_p = bpsi.reshape(1, 1)

    grid = (N, HWp // TILE_HW)

    weight_bytes = 4 * (F_int * (F_g + F_l) + 2 * F_int + 1)
    flops = (2 * N * HWp * F_int * (F_g + F_l)      # two branch matmuls
             + 5 * N * HWp * F_int                  # bias + relu + psi mul/reduce
             + 3 * N * HWp                          # sigmoid tail + psi bias
             + N * HWp * F_l)                       # x * psi
    bytes_accessed = itemsize * N * HWp * (F_g + 2 * F_l) + weight_bytes

    # VMEM: double-buffered g/x/out tiles + resident weights (+ headroom).
    vmem_needed = 2 * (F_g + 2 * F_l) * TILE_HW * itemsize + 2 * weight_bytes + (4 << 20)
    vmem_limit = int(min(max(vmem_needed, 32 << 20), 48 << 20))

    out = pl.pallas_call(
        _attention_block_kernel,
        out_shape=jax.ShapeDtypeStruct((N, F_l, HWp), x.dtype),
        grid=grid,
        in_specs=[
            pl.BlockSpec((None, F_g, TILE_HW), lambda b, s: (b, 0, s)),   # g block
            pl.BlockSpec((None, F_l, TILE_HW), lambda b, s: (b, 0, s)),   # x block
            pl.BlockSpec((F_int, F_g), lambda b, s: (0, 0)),              # Wg (resident)
            pl.BlockSpec((F_int, F_l), lambda b, s: (0, 0)),              # Wx (resident)
            pl.BlockSpec((F_int, 1), lambda b, s: (0, 0)),                # fused bias
            pl.BlockSpec((F_int, 1), lambda b, s: (0, 0)),                # psi weights
            pl.BlockSpec((1, 1), lambda b, s: (0, 0)),                    # psi bias
        ],
        out_specs=pl.BlockSpec((None, F_l, TILE_HW), lambda b, s: (b, 0, s)),
        compiler_params=pltpu.CompilerParams(
            dimension_semantics=("parallel", "parallel"),
            vmem_limit_bytes=vmem_limit),
        cost_estimate=pl.CostEstimate(
            flops=int(flops), transcendentals=int(N * HWp),
            bytes_accessed=int(bytes_accessed)),
    )(g3, x3, wg, wx, b_p, wpsi_p, bpsi_p)

    if HWp != HW:
        out = out[:, :, :HW]
    return out.reshape(N, F_l, H, W)


# ----------------------------------------------------------------------------
# Pure-JAX reference (for correctness check)
# ----------------------------------------------------------------------------
def _reference(g, x, params, eps=1e-5):
    def conv_bn(inp, p):
        w = p["w"].reshape(p["w"].shape[0], p["w"].shape[1])
        y = jnp.einsum("nchw,oc->nohw", inp, w) + p["b"][None, :, None, None]
        scale = (p["gamma"] / jnp.sqrt(p["var"] + eps))[None, :, None, None]
        return (y - p["mean"][None, :, None, None]) * scale + p["beta"][None, :, None, None]

    if g.shape[2:] != x.shape[2:]:
        g = _bilinear_resize_align_corners(g, x.shape[2], x.shape[3])
    a = jnp.maximum(conv_bn(g, params["W_g"]) + conv_bn(x, params["W_x"]), 0.0)
    psi = 1.0 / (1.0 + jnp.exp(-conv_bn(a, params["psi"])))
    return x * psi


# ----------------------------------------------------------------------------
# Self-test
# ----------------------------------------------------------------------------
def _make_branch_params(key, c_out, c_in):
    ks = jax.random.split(key, 6)
    return {
        "w": jax.random.normal(ks[0], (c_out, c_in, 1, 1), jnp.float32) * 0.1,
        "b": jax.random.normal(ks[1], (c_out,), jnp.float32) * 0.1,
        "gamma": 1.0 + 0.1 * jax.random.normal(ks[2], (c_out,), jnp.float32),
        "beta": 0.1 * jax.random.normal(ks[3], (c_out,), jnp.float32),
        "mean": 0.1 * jax.random.normal(ks[4], (c_out,), jnp.float32),
        "var": 0.5 + jnp.abs(jax.random.normal(ks[5], (c_out,), jnp.float32)),
    }


if __name__ == "__main__":
    # Small shapes consistent with the module: batch=2, F_g=F_l=32, F_int=16, 16x16.
    N, F_g, F_l, F_int, H, W = 2, 32, 32, 16, 16, 16

    key = jax.random.PRNGKey(0)
    kg, kx, k1, k2, k3 = jax.random.split(key, 5)

    g = jax.random.normal(kg, (N, F_g, H, W), dtype=jnp.float32)
    x = jax.random.normal(kx, (N, F_l, H, W), dtype=jnp.float32)

    params = {
        "W_g": _make_branch_params(k1, F_int, F_g),
        "W_x": _make_branch_params(k2, F_int, F_l),
        "psi": _make_branch_params(k3, 1, F_int),
    }

    # Default tile policy gives TILE_HW=128 here -> grid (2, 2): 4 steps, pipelined.
    fwd = jax.jit(functools.partial(attention_block_forward))
    out = jax.block_until_ready(fwd(g, x, params))

    assert out.shape == (N, F_l, H, W), out.shape

    ref = jax.block_until_ready(_reference(g, x, params))
    err = float(jnp.max(jnp.abs(out - ref)))
    assert err < 1e-4, f"max abs err {err}"

    print("KERNEL_OK")
</pallas_src>

<mosaic_0001>
module attributes {stable_mosaic.version = 11 : i64} {
  func.func @_attention_block_kernel(%arg0: i32, %arg1: i32, %arg2: memref<1x32x128xf32, #tpu.memory_space<vmem>>, %arg3: memref<1x32x128xf32, #tpu.memory_space<vmem>>, %arg4: memref<16x32xf32, #tpu.memory_space<vmem>>, %arg5: memref<16x32xf32, #tpu.memory_space<vmem>>, %arg6: memref<16x1xf32, #tpu.memory_space<vmem>>, %arg7: memref<16x1xf32, #tpu.memory_space<vmem>>, %arg8: memref<1x1xf32, #tpu.memory_space<vmem>>, %arg9: memref<1x32x128xf32, #tpu.memory_space<vmem>>) attributes {dimension_semantics = [#tpu.dimension_semantics<parallel>, #tpu.dimension_semantics<parallel>], iteration_bounds = array<i64: 2, 2>, scalar_prefetch = 0 : i64, scratch_operands = 0 : i64, tpu.core_type = #tpu.core_type<tc>, window_params = [{transform_indices = @transform_0, window_bounds = array<i64: 1, 32, 128>}, {transform_indices = @transform_1, window_bounds = array<i64: 1, 32, 128>}, {pipeline_mode = #tpu.pipeline_mode<synchronous>, transform_indices = @transform_2, window_bounds = array<i64: 16, 32>}, {pipeline_mode = #tpu.pipeline_mode<synchronous>, transform_indices = @transform_3, window_bounds = array<i64: 16, 32>}, {pipeline_mode = #tpu.pipeline_mode<synchronous>, transform_indices = @transform_4, window_bounds = array<i64: 16, 1>}, {pipeline_mode = #tpu.pipeline_mode<synchronous>, transform_indices = @transform_5, window_bounds = array<i64: 16, 1>}, {pipeline_mode = #tpu.pipeline_mode<synchronous>, transform_indices = @transform_6, window_bounds = array<i64: 1, 1>}, {transform_indices = @transform_7, window_bounds = array<i64: 1, 32, 128>}]} {
    %c0 = arith.constant 0 : index
    %c0_0 = arith.constant 0 : index
    %c0_1 = arith.constant 0 : index
    %0 = vector.load %arg2[%c0, %c0_0, %c0_1] : memref<1x32x128xf32, #tpu.memory_space<vmem>>, vector<1x32x128xf32>
    %1 = vector.shape_cast %0 : vector<1x32x128xf32> to vector<32x128xf32>
    %c0_2 = arith.constant 0 : index
    %c0_3 = arith.constant 0 : index
    %c0_4 = arith.constant 0 : index
    %2 = vector.load %arg3[%c0_2, %c0_3, %c0_4] : memref<1x32x128xf32, #tpu.memory_space<vmem>>, vector<1x32x128xf32>
    %3 = vector.shape_cast %2 : vector<1x32x128xf32> to vector<32x128xf32>
    %c0_5 = arith.constant 0 : index
    %c0_6 = arith.constant 0 : index
    %4 = vector.load %arg4[%c0_5, %c0_6] : memref<16x32xf32, #tpu.memory_space<vmem>>, vector<16x32xf32>
    %cst = arith.constant dense<0.000000e+00> : vector<16x128xf32>
    %5 = tpu.matmul %4, %1, %cst {dimension_numbers = #tpu.dot_dimension_numbers<[1], [0], [0], [1], [0, 0, 1, 1], [], []>} : vector<16x32xf32>, vector<32x128xf32>, vector<16x128xf32> -> vector<16x128xf32>
    %c0_7 = arith.constant 0 : index
    %c0_8 = arith.constant 0 : index
    %6 = vector.load %arg5[%c0_7, %c0_8] : memref<16x32xf32, #tpu.memory_space<vmem>>, vector<16x32xf32>
    %cst_9 = arith.constant dense<0.000000e+00> : vector<16x128xf32>
    %7 = tpu.matmul %6, %3, %cst_9 {dimension_numbers = #tpu.dot_dimension_numbers<[1], [0], [0], [1], [0, 0, 1, 1], [], []>} : vector<16x32xf32>, vector<32x128xf32>, vector<16x128xf32> -> vector<16x128xf32>
    %8 = arith.addf %5, %7 : vector<16x128xf32>
    %c0_10 = arith.constant 0 : index
    %c0_11 = arith.constant 0 : index
    %9 = vector.load %arg6[%c0_10, %c0_11] : memref<16x1xf32, #tpu.memory_space<vmem>>, vector<16x1xf32>
    %10 = vector.broadcast %9 : vector<16x1xf32> to vector<16x128xf32>
    %11 = arith.addf %8, %10 : vector<16x128xf32>
    %cst_12 = arith.constant 0.000000e+00 : f32
    %12 = vector.broadcast %cst_12 : f32 to vector<16x128xf32>
    %13 = arith.maximumf %11, %12 : vector<16x128xf32>
    %c0_13 = arith.constant 0 : index
    %c0_14 = arith.constant 0 : index
    %14 = vector.load %arg7[%c0_13, %c0_14] : memref<16x1xf32, #tpu.memory_space<vmem>>, vector<16x1xf32>
    %15 = vector.broadcast %14 : vector<16x1xf32> to vector<16x128xf32>
    %16 = arith.mulf %13, %15 : vector<16x128xf32>
    %cst_15 = arith.constant dense<0.000000e+00> : vector<128xf32>
    %17 = vector.multi_reduction <add>, %16, %cst_15 [0] : vector<16x128xf32> to vector<128xf32>
    %18 = vector.shape_cast %17 : vector<128xf32> to vector<1x128xf32>
    %c0_16 = arith.constant 0 : index
    %c0_17 = arith.constant 0 : index
    %19 = vector.load %arg8[%c0_16, %c0_17] : memref<1x1xf32, #tpu.memory_space<vmem>>, vector<1x1xf32>
    %20 = vector.broadcast %19 : vector<1x1xf32> to vector<1x128xf32>
    %21 = arith.addf %18, %20 : vector<1x128xf32>
    %22 = arith.negf %21 : vector<1x128xf32>
    %23 = math.exp %22 : vector<1x128xf32>
    %cst_18 = arith.constant 1.000000e+00 : f32
    %24 = vector.broadcast %cst_18 : f32 to vector<1x128xf32>
    %25 = arith.addf %24, %23 : vector<1x128xf32>
    %26 = arith.divf %24, %25 : vector<1x128xf32>
    %27 = vector.broadcast %26 : vector<1x128xf32> to vector<32x128xf32>
    %28 = arith.mulf %3, %27 : vector<32x128xf32>
    %c0_19 = arith.constant 0 : index
    %c0_20 = arith.constant 0 : index
    %c0_21 = arith.constant 0 : index
    %29 = vector.load %arg9[%c0_19, %c0_20, %c0_21] : memref<1x32x128xf32, #tpu.memory_space<vmem>>, vector<1x32x128xf32>
    %30 = vector.shape_cast %29 : vector<1x32x128xf32> to vector<32x128xf32>
    %31 = vector.shape_cast %28 : vector<32x128xf32> to vector<1x32x128xf32>
    tpu.vector_store %arg9[%c0_19, %c0_20, %c0_21], %31 {strides = array<i32>} : memref<1x32x128xf32, #tpu.memory_space<vmem>>, vector<1x32x128xf32>,
    return
  }
  func.func @transform_0(%arg0: i32, %arg1: i32) -> (i32, i32, i32) {
    %c0_i32 = arith.constant 0 : i32
    %c0_i32_0 = arith.constant 0 : i32
    return %arg0, %c0_i32, %arg1 : i32, i32, i32
  }
  func.func @transform_1(%arg0: i32, %arg1: i32) -> (i32, i32, i32) {
    %c0_i32 = arith.constant 0 : i32
    %c0_i32_0 = arith.constant 0 : i32
    return %arg0, %c0_i32, %arg1 : i32, i32, i32
  }
  func.func @transform_2(%arg0: i32, %arg1: i32) -> (i32, i32) {
    %c0_i32 = arith.constant 0 : i32
    %c0_i32_0 = arith.constant 0 : i32
    %c0_i32_1 = arith.constant 0 : i32
    return %c0_i32, %c0_i32_0 : i32, i32
  }
  func.func @transform_3(%arg0: i32, %arg1: i32) -> (i32, i32) {
    %c0_i32 = arith.constant 0 : i32
    %c0_i32_0 = arith.constant 0 : i32
    %c0_i32_1 = arith.constant 0 : i32
    return %c0_i32, %c0_i32_0 : i32, i32
  }
  func.func @transform_4(%arg0: i32, %arg1: i32) -> (i32, i32) {
    %c0_i32 = arith.constant 0 : i32
    %c0_i32_0 = arith.constant 0 : i32
    %c0_i32_1 = arith.constant 0 : i32
    return %c0_i32, %c0_i32_0 : i32, i32
  }
  func.func @transform_5(%arg0: i32, %arg1: i32) -> (i32, i32) {
    %c0_i32 = arith.constant 0 : i32
    %c0_i32_0 = arith.constant 0 : i32
    %c0_i32_1 = arith.constant 0 : i32
    return %c0_i32, %c0_i32_0 : i32, i32
  }
  func.func @transform_6(%arg0: i32, %arg1: i32) -> (i32, i32) {
    %c0_i32 = arith.constant 0 : i32
    %c0_i32_0 = arith.constant 0 : i32
    %c0_i32_1 = arith.constant 0 : i32
    return %c0_i32, %c0_i32_0 : i32, i32
  }
  func.func @transform_7(%arg0: i32, %arg1: i32) -> (i32, i32, i32) {
    %c0_i32 = arith.constant 0 : i32
    %c0_i32_0 = arith.constant 0 : i32
    return %arg0, %c0_i32, %arg1 : i32, i32, i32
  }
}

</mosaic_0001>

<bundles_post_ra>
// kernel: attention_block_forward.1
= control target key start
LH: loop header
LB: loop body
LE: loop exit
PB: predicated region body
PF: predicated region fallthrough
CT: control target
= control target key end

     0   :  { %s1187_s0 = inlined_call_operand.vmem [shape: f32[2,32,256], index: 0, kind: input, shape index: {}]   ;;  %s1188_s1 = inlined_call_operand.vmem [shape: f32[2,32,256], index: 1, kind: input, shape index: {}]   ;;  %s1189_s2 = inlined_call_operand.vmem [shape: f32[16,32], index: 2, kind: input, shape index: {}]   ;;  %s1190_s3 = inlined_call_operand.vmem [shape: f32[16,32], index: 3, kind: input, shape index: {}]   ;;  %s1191_s4 = inlined_call_operand.vmem [shape: f32[16,1], index: 4, kind: input, shape index: {}]   ;;  %s1192_s5 = inlined_call_operand.vmem [shape: f32[16,1], index: 5, kind: input, shape index: {}]   ;;  %s1193_s6 = inlined_call_operand.<no memory space> [shape: f32[1,1], index: 6, kind: input, shape index: {}]   ;;  %s1194_s7 = inlined_call_operand.vmem [shape: f32[2,32,256], index: 7, kind: output, shape index: {}]  }
   0x1   :  { %v12_v0 = vstv %s1193_s6 }
   0x2   :  { %13 = vst [vmem:[#allocation2] sm:$0x1] %v12_v0 }
   0x3   :  { %s1032_s26 = smov 0   ;;  %s1034_s27 = smov 0  }
   0x4   :  { %s1036_s28 = smov 0   ;;  %s1038_s29 = smov 0  }
   0x5   :  { %s1040_s30 = smov 0   ;;  %s1042_s8 = smov 0  }
   0x6   :  { %s1044_s9 = smov 0  }
   0x7 LB: > { %s28_s6 = sadd.s32 1, %s978_s30  ;;  %s31_s10 = sadd.s32 1, %s982_s8  ;;  %s986_s9 = sphi %s1044_s9, %s19_s9   ;;  %s982_s8 = sphi %s1042_s8, %s1202_s8   ;;  %s978_s30 = sphi %s1040_s30, %s1201_s30   ;;  %s974_s29 = sphi %s1038_s29, %s1200_s29   ;;  %s970_s28 = sphi %s1036_s28, %s1199_s28   ;;  %s966_s27 = sphi %s1034_s27, %s1198_s27   ;;  %s962_s26 = sphi %s1032_s26, %s1197_s26  }
   0x8   : > { %p29_p0 = scmp.ge.s32.totalorder %s28_s6, 2  ;;  %s793_s11 = sadd.s32 4294967295, %s986_s9  }
   0x9   : > { %p47_p1 = scmp.ne.s32.totalorder %s966_s27, %s962_s26  ;;  %p48_p2 = scmp.eq.s32.totalorder %s986_s9, 0 }
   0xa   : > { %s1204_s6 = smov (%p29_p0, %s28_s6), 0  ;;  %s1206_s10 = smov (!%p29_p0, %s31_s10), %s982_s8 }
   0xb   : > { %p33_p3 = scmp.ge.s32.totalorder %s1206_s10, 2  ;;  %p212_p4 = scmp.eq.s32.totalorder %s793_s11, 3 }
   0xc   : > { %s36_s12 = ssub.s32 %s978_s30, %s1204_s6  ;;  %p1078_p5 = por %p48_p2, %p47_p1 }
   0xd   : > { %s1208_s10 = smov (%p33_p3, %s1206_s10), 0  ;;  %p1084_p6 = por %p212_p4, %p47_p1 }
   0xe   : > { %s35_s15 = ssub.s32 %s982_s8, %s1208_s10  ;;  %s40_s17 = sadd.s32 1, %s966_s27 }
   0xf   : > { %s37_s16 = sor.u32 %s36_s12, %s35_s15  ;;  %p796_p8 = scmp.ge.s32.totalorder %s986_s9, 4 }
  0x10   : > { %p38_p7 = scmp.eq.s32.totalorder %s37_s16, 0 }
  0x11   : > { %249 = sbr.rel (%p796_p8) target bundleno = 40 (0x28), region = 36 }
  0x12   : > { %s1092_s18 = scalar_select %p38_p7, %s966_s27, %s40_s17  }
  0x18   : > { %252 = sbr.rel (!%p1078_p5) target bundleno = 32 (0x20), region = 40  ;;  %s254_s19 = sand.u32 (%p1078_p5), 1, %s966_s27  }
  0x19   : > { %s798_s20 = sshll.u32 (%p1078_p5), %s982_s8, 3  ;;  %s797_s21 = sshll.u32 (%p1078_p5), %s254_s19, 5 }
  0x1a   : > { %s258_s22 = sadd.s32 (%p1078_p5), %s978_s30, %s798_s20  ;;  %s256_s12 = scalar_lea.vmem (%p1078_p5), [#allocation3], %s797_s21 }
  0x1b   : > { %s799_s23 = sshll.u32 (%p1078_p5), %s258_s22, 3 }
  0x1c   : > { %s260_s11 = scalar_lea.vmem (%p1078_p5), %s1187_s0, %s799_s23 }
  0x1d   : > { %v294_v1 = vld [vmem:[%s260_s11] sm:$0xff] (%p1078_p5)  ;;  %v296_v2 = vld [vmem:[%s260_s11 + $0x10] sm:$0xff] (%p1078_p5) }
  0x1e   : > { %v298_v3 = vld [vmem:[%s260_s11 + $0x20] sm:$0xff] (%p1078_p5)  ;;  %295 = vst [vmem:[%s256_s12] sm:$0xff] (%p1078_p5), %v294_v1  ;;  %297 = vst [vmem:[%s256_s12 + $0x8] sm:$0xff] (%p1078_p5), %v296_v2  ;;  %v300_v4 = vld [vmem:[%s260_s11 + $0x30] sm:$0xff] (%p1078_p5) }
  0x1f   : > { %299 = vst [vmem:[%s256_s12 + $0x10] sm:$0xff] %v298_v3  ;;  %301 = vst [vmem:[%s256_s12 + $0x18] sm:$0xff] %v300_v4 }
  0x20 PF: > { %307 = sbr.rel (!%p1078_p5) target bundleno = 40 (0x28), region = 78  ;;  %s309_s15 = sand.u32 (%p1078_p5), 1, %s966_s27  }
  0x21   : > { %s801_s16 = sshll.u32 (%p1078_p5), %s982_s8, 3  ;;  %s800_s17 = sshll.u32 (%p1078_p5), %s309_s15, 5 }
  0x22   : > { %s313_s19 = sadd.s32 (%p1078_p5), %s978_s30, %s801_s16  ;;  %s311_s24 = scalar_lea.vmem (%p1078_p5), [#allocation4], %s800_s17 }
  0x23   : > { %s802_s20 = sshll.u32 (%p1078_p5), %s313_s19, 3 }
  0x24   : > { %s315_s21 = scalar_lea.vmem (%p1078_p5), %s1188_s1, %s802_s20 }
  0x25   : > { %v349_v5 = vld [vmem:[%s315_s21] sm:$0xff] (%p1078_p5)  ;;  %v351_v6 = vld [vmem:[%s315_s21 + $0x10] sm:$0xff] (%p1078_p5) }
  0x26   : > { %v353_v7 = vld [vmem:[%s315_s21 + $0x20] sm:$0xff] (%p1078_p5)  ;;  %350 = vst [vmem:[%s311_s24] sm:$0xff] (%p1078_p5), %v349_v5  ;;  %352 = vst [vmem:[%s311_s24 + $0x8] sm:$0xff] (%p1078_p5), %v351_v6  ;;  %v355_v8 = vld [vmem:[%s315_s21 + $0x30] sm:$0xff] (%p1078_p5) }
  0x27   : > { %354 = vst [vmem:[%s311_s24 + $0x10] sm:$0xff] %v353_v7  ;;  %356 = vst [vmem:[%s311_s24 + $0x18] sm:$0xff] %v355_v8 }
  0x28 PF: > { %p803_p9 = scmp.ge.s32.totalorder %s986_s9, 1  ;;  %p361_p10 = scmp.lt.s32.totalorder %s986_s9, 5 }
  0x2a   : > { %p362_p11 = pnand %p803_p9, %p361_p10 }
  0x2b   : > { %s368_s13 = sand.u32 (!%p362_p11), 1, %s962_s26   ;;  %v419_v9 = vld [vmem:[%s1190_s3] sm:$0xff] (!%p362_p11)  ;;  %vm421_vm0 = vcmask (!%p362_p11), 261120   ;;  %v988_v12 = vmov (!%p362_p11), 0   ;;  %v585_v26 = vld [vmem:[%s1191_s4 + $0x8] sm:$0xff] (!%p362_p11)  ;;  %v627_v47 = vlaneseq (!%p362_p11) }
  0x2c   : > { %365 = sbr.rel (%p362_p11) target bundleno = 334 (0x14e), region = 116  ;;  %v417_v10 = vld [vmem:[%s1189_s2] sm:$0xff] (!%p362_p11)  ;;  %s1120_s16 = sshll.u32 (!%p362_p11), %s368_s13, 5  ;;  %837 = vmatprep.mubr.msk.f32.mxu1 (!%p362_p11), %vm421_vm0, %v419_v9  ;;  %926 = vset.pattern.permute.xlu0 (!%p362_p11), %v988_v12  ;;  %v601_v27 = vld [vmem:[%s1192_s5 + $0x8] sm:$0xff] (!%p362_p11) }
  0x2d   : > { %848 = vmatprep.mubr.msk.f32.mxu0 (!%p362_p11), %vm421_vm0, %v417_v10  ;;  %v584_v11 = vld [vmem:[%s1191_s4] sm:$0xff] (!%p362_p11)  ;;  %927 = vset.pattern.permute.xlu1 (!%p362_p11), %v988_v12  ;;  %s377_s22 = scalar_lea.vmem (!%p362_p11), [#allocation4], %s1120_s16  ;;  %s370_s23 = scalar_lea.vmem (!%p362_p11), [#allocation3], %s1120_s16  ;;  %v420_v29 = vld [vmem:[%s1190_s3 + $0x8] sm:$0xff] (!%p362_p11)  ;;  %v628_v50 = vshrl.u32 (!%p362_p11), %v627_v47, 7 }
  0x2e   : > { %v600_v13 = vld [vmem:[%s1192_s5] sm:$0xff] (!%p362_p11)  ;;  %v1133_v15 = vld [vmem:[%s377_s22 + $0x8] sm:$0xff] (!%p362_p11)  ;;  %v1135_v16 = vld [vmem:[%s377_s22 + $0x10] sm:$0xff] (!%p362_p11)  ;;  %588 = vperm.xlu0 (!%p362_p11), %926, %v584_v11   ;;  %s408_s19 = scalar_lea.vmem (!%p362_p11), [#allocation5], %s1120_s16 }
  0x2f   : > { %v1131_v14 = vld [vmem:[%s377_s22] sm:$0xff] (!%p362_p11)  ;;  %604 = vperm.xlu1 (!%p362_p11), %927, %v600_v13   ;;  %v410_v19 = vld [vmem:[%s370_s23 + $0x8] sm:$0xff] (!%p362_p11)  ;;  %v416_v20 = vld [vmem:[%s377_s22 + $0x18] sm:$0xff] (!%p362_p11)  ;;  %v629_v53 = vsub.s32 (!%p362_p11), 0, %v628_v50 }
  0x30   : > { %v851_v17 = vpack.c.bf16 (!%p362_p11), %v1133_v15, %v1131_v14  ;;  %v409_v18 = vld [vmem:[%s370_s23] sm:$0xff] (!%p362_p11)  ;;  %v855_v22 = vpack.c.bf16 (!%p362_p11), %v416_v20, %v1135_v16  ;;  %v411_v23 = vld [vmem:[%s370_s23 + $0x10] sm:$0xff] (!%p362_p11)  ;;  %v412_v24 = vld [vmem:[%s370_s23 + $0x18] sm:$0xff] (!%p362_p11) }
  0x31   : > { %v859_v21 = vpack.c.bf16 (!%p362_p11), %v410_v19, %v409_v18  ;;  %v863_v25 = vpack.c.bf16 (!%p362_p11), %v412_v24, %v411_v23  ;;  %v621_v28 = vld [vmem:[#allocation2] sm:$0x1] (!%p362_p11)  ;;  %v418_v30 = vld [vmem:[%s1189_s2 + $0x8] sm:$0xff] (!%p362_p11) }
  0x32   : > { %852 = vmatprep.subr.bf16.mxu1 (!%p362_p11), %v851_v17  ;;  %593 = vperm.xlu0 (!%p362_p11), %926, %v585_v26  }
  0x33   : > { %860 = vmatprep.subr.bf16.mxu0 %v859_v21  ;;  %854 = vmatpush3.bf16.msra.mxu1 %v851_v17  ;;  %s813_s26 = sshll.u32 (%p1084_p6), %s974_s29, 3 }
  0x34   : > { %862 = vmatpush3.bf16.msra.mxu0 %v859_v21  ;;  %856 = vmatprep.subr.bf16.mxu1 %v855_v22  ;;  %s654_s20 = sadd.s32 (%p1084_p6), %s970_s28, %s813_s26 }
  0x35   : > { %864 = vmatprep.subr.bf16.mxu0 %v863_v25  ;;  %609 = vperm.xlu1 %927, %v601_v27   ;;  %s814_s22 = sshll.u32 (%p1084_p6), %s654_s20, 3 }
  0x36   : > { %624 = vperm.xlu0 %926, %v621_v28   ;;  %s656_s16 = scalar_lea.vmem (%p1084_p6), %s1194_s7, %s814_s22 }
  0x37   : > { %858 = vmatpush3.bf16.msra.mxu1 %v855_v22 }
  0x38   : > { %866 = vmatpush3.bf16.msra.mxu0 %v863_v25 }
  0x3a   : > { %838 = vmatmul.mubr.msk.f32.vlgmr.msra.gmra.mrb[0].mxu1 %vm421_vm0, %v420_v29 }
  0x3b   : > { %849 = vmatmul.mubr.msk.f32.vlgmr.msra.gmra.mrb[0].mxu0 %vm421_vm0, %v418_v30 }
  0xad   : > { %v589_v31 = vpop.permute.xlu0 %588 }
  0xae   : > { %v605_v32 = vpop.permute.xlu1 %604 }
  0xb1   : > { %v594_v38 = vpop.permute.xlu0 %593 }
  0xb4   : > { %v610_v44 = vpop.permute.xlu1 %609 }
  0xb5   : > { %v625_v55 = vpop.permute.xlu0 %624 }
  0xb6   : > { %v630_v57 = vrot.slane %v625_v55, %v629_v53 }
 0x10d   : > { %v839_v33 = vpop.f32.mrb[0].mxu1 }
 0x10e   : > { %v850_v34 = vpop.f32.mrb[0].mxu0  ;;  %v494_v35 = vpop.f32.mrb[1].mxu1 }
 0x10f   : > { %v581_v36 = vadd.f32 %v850_v34, %v839_v33  ;;  %v575_v37 = vpop.f32.mrb[1].mxu0 }
 0x110   : > { %v576_v39 = vadd.f32 %v575_v37, %v494_v35 }
 0x111   : > { %v597_v40 = vadd.f32 %v594_v38, %v581_v36 }
 0x112   : > { %v596_v41 = vadd.f32 %v589_v31, %v576_v39 }
 0x113   : > { %v599_v42 = vmax.f32 %v597_v40, 0.0 }
 0x114   : > { %v598_v43 = vmax.f32 %v596_v41, 0.0 }
 0x115   : > { %v613_v45 = vmul.f32 %v610_v44, %v599_v42 }
 0x116   : > { %v612_v46 = vmul.f32 %v605_v32, %v598_v43 }
 0x118   : > { %v614_v48 = vadd.f32 %v613_v45, %v612_v46 }
 0x11a   : > { %v615_v49 = vrot.slane %v614_v48, 4 }
 0x11c   : > { %v616_v51 = vadd.f32 %v615_v49, %v614_v48 }
 0x11e   : > { %v617_v52 = vrot.slane %v616_v51, 2 }
 0x120   : > { %v618_v54 = vadd.f32 %v617_v52, %v616_v51 }
 0x122   : > { %v619_v56 = vrot.slane %v618_v54, 1 }
 0x124   : > { %v620_v58 = vadd.f32 %v619_v56, %v618_v54 }
 0x126   : > { %v631_v59 = vadd.f32 %v630_v57, %v620_v58 }
 0x128   : > { %v811_v60 = vmul.f32 -1.442695, %v631_v59 }
 0x12a   : > { %928 = vpow2.f32 %v811_v60 }
 0x134   : > { %v929_v61 = vpop.eup %928 }
 0x135   : > { %v635_v62 = vadd.f32 1.0, %v929_v61 }
 0x137   : > { %930 = vrcp.f32 %v635_v62 }
 0x13f   : > { %652 = sbr.rel (!%p1084_p6) target bundleno = 334 (0x14e), region = 128 }
 0x141   : > { %v931_v63 = vpop.eup %930 }
 0x142   : > { %v638_v0 = vmul.f32 %v931_v63, %v1131_v14  ;;  %v639_v1 = vmul.f32 %v931_v63, %v1133_v15  ;;  %v640_v2 = vmul.f32 %v931_v63, %v1135_v16  ;;  %v641_v3 = vmul.f32 %v931_v63, %v416_v20 }
 0x144   : > { %642 = vst [vmem:[%s408_s19] sm:$0xff] %v638_v0  ;;  %643 = vst [vmem:[%s408_s19 + $0x8] sm:$0xff] %v639_v1 }
 0x145   : > { %644 = vst [vmem:[%s408_s19 + $0x10] sm:$0xff] %v640_v2  ;;  %645 = vst [vmem:[%s408_s19 + $0x18] sm:$0xff] %v641_v3 }
 0x14b   : > { %v690_v4 = vld [vmem:[%s408_s19] sm:$0xff]  ;;  %v692_v5 = vld [vmem:[%s408_s19 + $0x8] sm:$0xff] }
 0x14c   : > { %v694_v6 = vld [vmem:[%s408_s19 + $0x10] sm:$0xff]  ;;  %v696_v7 = vld [vmem:[%s408_s19 + $0x18] sm:$0xff]  ;;  %691 = vst [vmem:[%s656_s16] sm:$0xff] %v690_v4  ;;  %693 = vst [vmem:[%s656_s16 + $0x10] sm:$0xff] %v692_v5 }
 0x14d   : > { %695 = vst [vmem:[%s656_s16 + $0x20] sm:$0xff] %v694_v6  ;;  %697 = vst [vmem:[%s656_s16 + $0x30] sm:$0xff] %v696_v7 }
 0x14e PF: > { %s19_s9 = sadd.s32 1, %s986_s9   ;;  %s1197_s26 = smov %s966_s27 }
 0x14f   : > { %p16_p12 = scmp.ge.s32.totalorder %s19_s9, 6   ;;  %s1198_s27 = smov %s1092_s18 }
 0x150   : > { %s1199_s28 = smov %s978_s30  ;;  %s1200_s29 = smov %s982_s8 }
 0x151   : > { %s1201_s30 = smov %s1204_s6  ;;  %s1202_s8 = smov %s1208_s10 }
 0x152   :  { %18 = sbr.rel (!%p16_p12) target bundleno = 7 (0x7), region = 205 }

</bundles_post_ra>
